<compile_context>
chip_gen: v7x
topology: tpu7x:2x2x1
jax: 0.10.0
libtpu: 0.0.40
codegen_flags: <defaults>
</compile_context>

<pallas_src>
import functools
import math

import jax
import jax.numpy as jnp
from jax.experimental import pallas as pl
from jax.experimental.pallas import tpu as pltpu


_VMEM_LIMIT = 32 * 1024 * 1024        # conservative scoped-VMEM cap (ok on v5e/v6e/v7x)
_ATTN_BLOCK_BUDGET = 8 * 1024 * 1024  # q/k/v/ctx block bytes budget (double-buffered)
_ROW_ALIGNS = (256, 64, 16, 8)
_COL_ALIGNS = (256, 128)              # prefer 256-multiples for the v6e/v7x MXU


def _pick_tile(dim, target, aligns):
    """Largest tile <= target that divides dim, preferring larger alignments.

    Falls back to the full dim (a full-extent block is always legal)."""
    if dim <= target:
        return dim
    for a in aligns:
        t = (target // a) * a
        while t >= a:
            if dim % t == 0:
                return t
            t -= a
    return dim


# ----------------------------------------------------------------------------
# Linear kernels (single pass over K; bf16 MXU operands, f32 accumulation)
# ----------------------------------------------------------------------------
def _linear_kernel(x_ref, w_ref, b_ref, o_ref, *, activation):
    x = x_ref[...].astype(jnp.bfloat16)           # cast in-kernel (free under MXU)
    y = jnp.dot(x, w_ref[...], preferred_element_type=jnp.float32) + b_ref[...]
    if activation == "gelu":
        # exact erf-based GELU (HF BERT default hidden_act='gelu')
        y = 0.5 * y * (1.0 + jax.lax.erf(y * 0.7071067811865476))
    elif activation == "tanh":
        y = jnp.tanh(y)
    o_ref[...] = y.astype(o_ref.dtype)


def linear(x, w, b, activation=None, out_dtype=jnp.float32, *, tm=256, tn=512):
    """y = act(x @ w + b).  x:(M,K), w:(K,N) bf16, b:(N,).  K is not tiled."""
    M, K = x.shape
    Kw, N = w.shape
    assert K == Kw
    tm = _pick_tile(M, tm, _ROW_ALIGNS)
    tn = _pick_tile(N, tn, _COL_ALIGNS)
    grid = (M // tm, N // tn)
    cost = pl.CostEstimate(
        flops=2 * M * N * K,
        transcendentals=M * N if activation else 0,
        bytes_accessed=(M * K * x.dtype.itemsize + K * N * 2 + N * 4
                        + M * N * jnp.dtype(out_dtype).itemsize),
    )
    return pl.pallas_call(
        functools.partial(_linear_kernel, activation=activation),
        grid=grid,
        out_shape=jax.ShapeDtypeStruct((M, N), out_dtype),
        in_specs=[
            pl.BlockSpec((tm, K), lambda i, j: (i, 0)),
            pl.BlockSpec((K, tn), lambda i, j: (0, j)),
            pl.BlockSpec((1, tn), lambda i, j: (0, j)),
        ],
        out_specs=pl.BlockSpec((tm, tn), lambda i, j: (i, j)),
        compiler_params=pltpu.CompilerParams(
            dimension_semantics=("parallel", "parallel"),
            vmem_limit_bytes=_VMEM_LIMIT,
        ),
        cost_estimate=cost,
    )(x, w, b.astype(jnp.float32).reshape(1, N))


def _linear_res_ln_kernel(x_ref, w_ref, b_ref, r_ref, g_ref, bb_ref, o_ref, *, eps):
    x = x_ref[...].astype(jnp.bfloat16)
    y = jnp.dot(x, w_ref[...], preferred_element_type=jnp.float32) + b_ref[...]
    y = y + r_ref[...].astype(jnp.float32)            # residual add
    mu = jnp.mean(y, axis=-1, keepdims=True)          # LayerNorm fused in epilogue
    d = y - mu
    var = jnp.mean(d * d, axis=-1, keepdims=True)
    o_ref[...] = (d * jax.lax.rsqrt(var + eps) * g_ref[...] + bb_ref[...]
                  ).astype(o_ref.dtype)


def linear_residual_layernorm(x, w, b, res, gamma, beta, eps=1e-12, *, tm=256):
    """LayerNorm(x @ w + b + res): matmul with residual-add + LN fused into the
    epilogue.  Requires the full output row per block (tn == N)."""
    M, K = x.shape
    Kw, N = w.shape
    assert K == Kw and res.shape == (M, N)
    tm = _pick_tile(M, tm, _ROW_ALIGNS)
    grid = (M // tm,)
    cost = pl.CostEstimate(
        flops=2 * M * N * K + 10 * M * N,
        transcendentals=M,
        bytes_accessed=(M * K * x.dtype.itemsize + K * N * 2 + 3 * N * 4
                        + M * N * res.dtype.itemsize + M * N * 4),
    )
    return pl.pallas_call(
        functools.partial(_linear_res_ln_kernel, eps=eps),
        grid=grid,
        out_shape=jax.ShapeDtypeStruct((M, N), jnp.float32),
        in_specs=[
            pl.BlockSpec((tm, K), lambda i: (i, 0)),
            pl.BlockSpec((K, N), lambda i: (0, 0)),
            pl.BlockSpec((1, N), lambda i: (0, 0)),
            pl.BlockSpec((tm, N), lambda i: (i, 0)),
            pl.BlockSpec((1, N), lambda i: (0, 0)),
            pl.BlockSpec((1, N), lambda i: (0, 0)),
        ],
        out_specs=pl.BlockSpec((tm, N), lambda i: (i, 0)),
        compiler_params=pltpu.CompilerParams(
            dimension_semantics=("parallel",),
            vmem_limit_bytes=_VMEM_LIMIT,
        ),
        cost_estimate=cost,
    )(x, w, b.astype(jnp.float32).reshape(1, N), res,
      gamma.reshape(1, N), beta.reshape(1, N))


# ----------------------------------------------------------------------------
# Multi-head self-attention reading the fused (B*S, 3H) qkv slab directly
# ----------------------------------------------------------------------------
def _attn_heads(q_ref, k_ref, v_ref, bias, o_ref, *, heads, head_dim, scale,
                q_col0=0, k_col0=0, v_col0=0):
    # TODO(synk): for S >= ~1024 add a KV-block loop with online softmax
    # (flash style) to bound the per-head (S,S) score footprint on v7x VMEM.
    for h in range(heads):
        q = q_ref[:, q_col0 + h * head_dim: q_col0 + (h + 1) * head_dim].astype(jnp.bfloat16)
        k = k_ref[:, k_col0 + h * head_dim: k_col0 + (h + 1) * head_dim].astype(jnp.bfloat16)
        v = v_ref[:, v_col0 + h * head_dim: v_col0 + (h + 1) * head_dim].astype(jnp.bfloat16)
        # contraction over head_dim of both operands -> no in-kernel K transpose
        s = jax.lax.dot_general(q, k, (((1,), (1,)), ((), ())),
                                preferred_element_type=jnp.float32) * scale + bias
        s = s - jnp.max(s, axis=-1, keepdims=True)
        p = jnp.exp(s)
        p = p * pl.reciprocal(jnp.sum(p, axis=-1, keepdims=True), approx=True)
        ctx = jnp.dot(p.astype(jnp.bfloat16), v, preferred_element_type=jnp.float32)
        o_ref[:, h * head_dim:(h + 1) * head_dim] = ctx.astype(o_ref.dtype)


def _attn_sliced_kernel(q_ref, k_ref, v_ref, m_ref, o_ref, *, heads, head_dim, scale):
    _attn_heads(q_ref, k_ref, v_ref, m_ref[0], o_ref,
                heads=heads, head_dim=head_dim, scale=scale)


def _attn_packed_kernel(qkv_ref, m_ref, o_ref, *, heads, head_dim, scale, hidden):
    _attn_heads(qkv_ref, qkv_ref, qkv_ref, m_ref[0], o_ref,
                heads=heads, head_dim=head_dim, scale=scale,
                q_col0=0, k_col0=hidden, v_col0=2 * hidden)


def attention(qkv, bias, batch, seq, n_heads, head_dim):
    """Self-attention from the fused qkv slab.

    qkv:  (B*S, 3H) bf16, columns laid out as [q | k | v], head-major inside each.
    bias: (B, 1, S) f32 additive mask.
    Returns the context as a lane-dense (B*S, H) bf16 slab (feeds the wo matmul)."""
    H = n_heads * head_dim
    assert qkv.shape == (batch * seq, 3 * H)
    scale = 1.0 / math.sqrt(head_dim)
    out_shape = jax.ShapeDtypeStruct((batch * seq, H), jnp.bfloat16)

    # heads per block: largest group whose column width is a 128 multiple and
    # whose (q,k,v,ctx) blocks stay within a modest VMEM budget at this seq len.
    hb = 0
    for c in range(1, n_heads + 1):
        width = c * head_dim
        if (n_heads % c == 0 and width % 128 == 0
                and 8 * seq * width * 2 <= _ATTN_BLOCK_BUDGET):
            hb = c

    if hb:
        groups = n_heads // hb
        width = hb * head_dim

        def qkv_spec(col_block_off):
            return pl.BlockSpec((seq, width),
                                lambda b, g, off=col_block_off: (b, off + g))

        return pl.pallas_call(
            functools.partial(_attn_sliced_kernel, heads=hb, head_dim=head_dim,
                              scale=scale),
            grid=(batch, groups),
            out_shape=out_shape,
            in_specs=[
                qkv_spec(0),            # Q columns  [g*width, ...)
                qkv_spec(groups),       # K columns  [H + g*width, ...)
                qkv_spec(2 * groups),   # V columns  [2H + g*width, ...)
                pl.BlockSpec((1, 1, seq), lambda b, g: (b, 0, 0)),
            ],
            out_specs=pl.BlockSpec((seq, width), lambda b, g: (b, g)),
            compiler_params=pltpu.CompilerParams(
                dimension_semantics=("parallel", "parallel"),
                vmem_limit_bytes=_VMEM_LIMIT,
            ),
        )(qkv, qkv, qkv, bias)

    # Fallback for tiny configs (H not 128-aligned): one batch element per grid
    # step, full (S, 3H) slab, head slicing inside the kernel.
    return pl.pallas_call(
        functools.partial(_attn_packed_kernel, heads=n_heads, head_dim=head_dim,
                          scale=scale, hidden=H),
        grid=(batch,),
        out_shape=out_shape,
        in_specs=[
            pl.BlockSpec((seq, 3 * H), lambda b: (b, 0)),
            pl.BlockSpec((1, 1, seq), lambda b: (b, 0, 0)),
        ],
        out_specs=pl.BlockSpec((seq, H), lambda b: (b, 0)),
        compiler_params=pltpu.CompilerParams(
            dimension_semantics=("parallel",),
            vmem_limit_bytes=_VMEM_LIMIT,
        ),
    )(qkv, bias)


# ----------------------------------------------------------------------------
# Parameter init (deterministic, synthetic — mirrors the module's __init__ shapes)
# NOTE: MidiBert also builds word_emb (5 Embeddings) and in_linear in __init__,
# but its forward() never touches them, so they are not materialized here.
# Matmul weights are stored in bf16 (MXU operands); LN params / biases stay f32.
# ----------------------------------------------------------------------------
def init_params(key, cfg):
    H, L, I, P = cfg["hidden"], cfg["num_layers"], cfg["intermediate"], cfg["max_pos"]
    state = {"key": key}

    def w(shape, std=0.02, dtype=jnp.bfloat16):
        state["key"], sub = jax.random.split(state["key"])
        return (std * jax.random.normal(sub, shape)).astype(dtype)

    dense_w = w((6, H))
    params = {
        # MidiBert.dense: nn.Linear(6, hidden) (stored as (in,out), 6 padded to 8)
        "dense_w_pad": jnp.pad(dense_w, ((0, 2), (0, 0))),
        "dense_b": w((H,), dtype=jnp.float32),
        # BertEmbeddings
        "pos_emb": w((P, H), dtype=jnp.float32),
        "tok_type_emb": w((2, H), dtype=jnp.float32),
        "emb_ln_g": jnp.ones((H,), jnp.float32),
        "emb_ln_b": jnp.zeros((H,), jnp.float32),
        # BertPooler
        "pool_w": w((H, H)),
        "pool_b": jnp.zeros((H,), jnp.float32),
        "layers": [],
    }
    for _ in range(L):
        params["layers"].append({
            # fused QKV projection: columns laid out as [wq | wk | wv]
            "wqkv": w((H, 3 * H)), "bqkv": jnp.zeros((3 * H,), jnp.float32),
            "wo": w((H, H)), "bo": jnp.zeros((H,), jnp.float32),
            "ln1_g": jnp.ones((H,), jnp.float32), "ln1_b": jnp.zeros((H,), jnp.float32),
            "wi": w((H, I)), "bi": jnp.zeros((I,), jnp.float32),
            "wo2": w((I, H)), "bo2": jnp.zeros((H,), jnp.float32),
            "ln2_g": jnp.ones((H,), jnp.float32), "ln2_b": jnp.zeros((H,), jnp.float32),
        })
    return params


# ----------------------------------------------------------------------------
# MidiBert forward: dense(6->H) fused with BertEmbeddings, then the encoder
# ----------------------------------------------------------------------------
def midibert_forward(params, input_ids, attn_mask, cfg):
    B, S, F = input_ids.shape                     # F == 6
    H, nH = cfg["hidden"], cfg["num_heads"]
    dh = H // nH
    assert S <= cfg["max_pos"], "sequence length exceeds position-embedding table"

    # MidiBert.dense + BertEmbeddings (pos + token_type(0) + LayerNorm), fused:
    # x = LN(input.float() @ Wd + bd + pos + tok0)
    x_in = input_ids.astype(jnp.float32).reshape(B * S, F)
    xp = jnp.pad(x_in, ((0, 0), (0, 8 - F)))      # pad 6 -> 8 features (zeros)
    pos = params["pos_emb"][:S]                   # (S, H)
    tok = params["tok_type_emb"][0]               # (H,)
    extra = jnp.broadcast_to(pos[None] + tok[None, None], (B, S, H)).reshape(B * S, H)
    x = linear_residual_layernorm(xp, params["dense_w_pad"], params["dense_b"],
                                  extra, params["emb_ln_g"], params["emb_ln_b"])

    # extended attention mask: (1 - mask) * -10000, shared across heads
    if attn_mask is None:
        attn_mask = jnp.ones((B, S), jnp.float32)
    ext_bias = ((1.0 - attn_mask.astype(jnp.float32)) * -10000.0).reshape(B, 1, S)

    hidden_states = [x.reshape(B, S, H)]
    for layer in params["layers"]:
        # fused Q/K/V projection, bf16 output (only consumed by the MXU)
        qkv = linear(x, layer["wqkv"], layer["bqkv"], out_dtype=jnp.bfloat16)
        # heads sliced out of the qkv slab by BlockSpecs; lane-dense bf16 context
        ctx = attention(qkv, ext_bias, B, S, nH, dh)                 # (B*S, H) bf16
        # output proj + residual + LayerNorm fused
        x1 = linear_residual_layernorm(ctx, layer["wo"], layer["bo"], x,
                                       layer["ln1_g"], layer["ln1_b"])
        # FFN: intermediate in bf16 (only consumed by the MXU), GELU fused
        inter = linear(x1, layer["wi"], layer["bi"], activation="gelu",
                       out_dtype=jnp.bfloat16)
        x = linear_residual_layernorm(inter, layer["wo2"], layer["bo2"], x1,
                                      layer["ln2_g"], layer["ln2_b"])
        hidden_states.append(x.reshape(B, S, H))

    last = x.reshape(B, S, H)
    pooled = linear(last[:, 0, :], params["pool_w"], params["pool_b"],
                    activation="tanh")
    return {
        "last_hidden_state": last,
        "pooler_output": pooled,
        "hidden_states": tuple(hidden_states),
    }


# ----------------------------------------------------------------------------
if __name__ == "__main__":
    # Small but representative config: head_dim=64 and 128-aligned head groups
    # exercise the BlockSpec column-sliced attention path.
    B, S, F = 2, 16, 6
    cfg = {"hidden": 128, "num_heads": 2, "num_layers": 2,
           "intermediate": 256, "max_pos": 32}

    key = jax.random.PRNGKey(0)
    k_params, k_ids = jax.random.split(key)
    params = init_params(k_params, cfg)

    input_ids = jax.random.randint(k_ids, (B, S, F), 0, 50, dtype=jnp.int32)
    attn_mask = jnp.ones((B, S), dtype=jnp.float32)

    out = midibert_forward(params, input_ids, attn_mask, cfg)
    jax.block_until_ready(out)

    assert out["last_hidden_state"].shape == (B, S, cfg["hidden"])
    assert out["pooler_output"].shape == (B, cfg["hidden"])
    assert len(out["hidden_states"]) == cfg["num_layers"] + 1
    print("KERNEL_OK")
</pallas_src>

<mosaic_0001>
module attributes {stable_mosaic.version = 11 : i64} {
  func.func @_linear_res_ln_kernel(%arg0: i32, %arg1: memref<32x8xf32, #tpu.memory_space<vmem>>, %arg2: memref<8x128xbf16, #tpu.memory_space<vmem>>, %arg3: memref<1x128xf32, #tpu.memory_space<vmem>>, %arg4: memref<32x128xf32, #tpu.memory_space<vmem>>, %arg5: memref<1x128xf32, #tpu.memory_space<vmem>>, %arg6: memref<1x128xf32, #tpu.memory_space<vmem>>, %arg7: memref<32x128xf32, #tpu.memory_space<vmem>>) attributes {dimension_semantics = [#tpu.dimension_semantics<parallel>], iteration_bounds = array<i64: 1>, scalar_prefetch = 0 : i64, scratch_operands = 0 : i64, tpu.core_type = #tpu.core_type<tc>, window_params = [{transform_indices = @transform_0, window_bounds = array<i64: 32, 8>}, {pipeline_mode = #tpu.pipeline_mode<synchronous>, transform_indices = @transform_1, window_bounds = array<i64: 8, 128>}, {pipeline_mode = #tpu.pipeline_mode<synchronous>, transform_indices = @transform_2, window_bounds = array<i64: 1, 128>}, {transform_indices = @transform_3, window_bounds = array<i64: 32, 128>}, {pipeline_mode = #tpu.pipeline_mode<synchronous>, transform_indices = @transform_4, window_bounds = array<i64: 1, 128>}, {pipeline_mode = #tpu.pipeline_mode<synchronous>, transform_indices = @transform_5, window_bounds = array<i64: 1, 128>}, {transform_indices = @transform_6, window_bounds = array<i64: 32, 128>}]} {
    %c0 = arith.constant 0 : index
    %c0_0 = arith.constant 0 : index
    %0 = vector.load %arg1[%c0, %c0_0] : memref<32x8xf32, #tpu.memory_space<vmem>>, vector<32x8xf32>
    %1 = arith.truncf %0 : vector<32x8xf32> to vector<32x8xbf16>
    %c0_1 = arith.constant 0 : index
    %c0_2 = arith.constant 0 : index
    %2 = vector.load %arg2[%c0_1, %c0_2] : memref<8x128xbf16, #tpu.memory_space<vmem>>, vector<8x128xbf16>
    %cst = arith.constant dense<0.000000e+00> : vector<32x128xf32>
    %3 = tpu.matmul %1, %2, %cst {dimension_numbers = #tpu.dot_dimension_numbers<[1], [0], [0], [1], [0, 0, 1, 1], [], []>} : vector<32x8xbf16>, vector<8x128xbf16>, vector<32x128xf32> -> vector<32x128xf32>
    %c0_3 = arith.constant 0 : index
    %c0_4 = arith.constant 0 : index
    %4 = vector.load %arg3[%c0_3, %c0_4] : memref<1x128xf32, #tpu.memory_space<vmem>>, vector<1x128xf32>
    %5 = vector.broadcast %4 : vector<1x128xf32> to vector<32x128xf32>
    %6 = arith.addf %3, %5 : vector<32x128xf32>
    %c0_5 = arith.constant 0 : index
    %c0_6 = arith.constant 0 : index
    %7 = vector.load %arg4[%c0_5, %c0_6] : memref<32x128xf32, #tpu.memory_space<vmem>>, vector<32x128xf32>
    %8 = arith.addf %6, %7 : vector<32x128xf32>
    %cst_7 = arith.constant dense<0.000000e+00> : vector<32xf32>
    %9 = vector.multi_reduction <add>, %8, %cst_7 [1] : vector<32x128xf32> to vector<32xf32>
    %10 = vector.shape_cast %9 : vector<32xf32> to vector<32x1xf32>
    %cst_8 = arith.constant 1.280000e+02 : f32
    %11 = vector.broadcast %cst_8 : f32 to vector<32x1xf32>
    %12 = arith.divf %10, %11 : vector<32x1xf32>
    %13 = vector.broadcast %12 : vector<32x1xf32> to vector<32x128xf32>
    %14 = arith.subf %8, %13 : vector<32x128xf32>
    %15 = arith.mulf %14, %14 : vector<32x128xf32>
    %cst_9 = arith.constant dense<0.000000e+00> : vector<32xf32>
    %16 = vector.multi_reduction <add>, %15, %cst_9 [1] : vector<32x128xf32> to vector<32xf32>
    %17 = vector.shape_cast %16 : vector<32xf32> to vector<32x1xf32>
    %cst_10 = arith.constant 1.280000e+02 : f32
    %18 = vector.broadcast %cst_10 : f32 to vector<32x1xf32>
    %19 = arith.divf %17, %18 : vector<32x1xf32>
    %cst_11 = arith.constant 9.99999996E-13 : f32
    %20 = vector.broadcast %cst_11 : f32 to vector<32x1xf32>
    %21 = arith.addf %19, %20 : vector<32x1xf32>
    %22 = math.rsqrt %21 : vector<32x1xf32>
    %23 = vector.broadcast %22 : vector<32x1xf32> to vector<32x128xf32>
    %24 = arith.mulf %14, %23 : vector<32x128xf32>
    %c0_12 = arith.constant 0 : index
    %c0_13 = arith.constant 0 : index
    %25 = vector.load %arg5[%c0_12, %c0_13] : memref<1x128xf32, #tpu.memory_space<vmem>>, vector<1x128xf32>
    %26 = vector.broadcast %25 : vector<1x128xf32> to vector<32x128xf32>
    %27 = arith.mulf %24, %26 : vector<32x128xf32>
    %c0_14 = arith.constant 0 : index
    %c0_15 = arith.constant 0 : index
    %28 = vector.load %arg6[%c0_14, %c0_15] : memref<1x128xf32, #tpu.memory_space<vmem>>, vector<1x128xf32>
    %29 = vector.broadcast %28 : vector<1x128xf32> to vector<32x128xf32>
    %30 = arith.addf %27, %29 : vector<32x128xf32>
    %c0_16 = arith.constant 0 : index
    %c0_17 = arith.constant 0 : index
    %31 = vector.load %arg7[%c0_16, %c0_17] : memref<32x128xf32, #tpu.memory_space<vmem>>, vector<32x128xf32>
    tpu.vector_store %arg7[%c0_16, %c0_17], %30 {strides = array<i32>} : memref<32x128xf32, #tpu.memory_space<vmem>>, vector<32x128xf32>,
    return
  }
  func.func @transform_0(%arg0: i32) -> (i32, i32) {
    %c0_i32 = arith.constant 0 : i32
    %c0_i32_0 = arith.constant 0 : i32
    return %arg0, %c0_i32 : i32, i32
  }
  func.func @transform_1(%arg0: i32) -> (i32, i32) {
    %c0_i32 = arith.constant 0 : i32
    %c0_i32_0 = arith.constant 0 : i32
    %c0_i32_1 = arith.constant 0 : i32
    return %c0_i32, %c0_i32_0 : i32, i32
  }
  func.func @transform_2(%arg0: i32) -> (i32, i32) {
    %c0_i32 = arith.constant 0 : i32
    %c0_i32_0 = arith.constant 0 : i32
    %c0_i32_1 = arith.constant 0 : i32
    return %c0_i32, %c0_i32_0 : i32, i32
  }
  func.func @transform_3(%arg0: i32) -> (i32, i32) {
    %c0_i32 = arith.constant 0 : i32
    %c0_i32_0 = arith.constant 0 : i32
    return %arg0, %c0_i32 : i32, i32
  }
  func.func @transform_4(%arg0: i32) -> (i32, i32) {
    %c0_i32 = arith.constant 0 : i32
    %c0_i32_0 = arith.constant 0 : i32
    %c0_i32_1 = arith.constant 0 : i32
    return %c0_i32, %c0_i32_0 : i32, i32
  }
  func.func @transform_5(%arg0: i32) -> (i32, i32) {
    %c0_i32 = arith.constant 0 : i32
    %c0_i32_0 = arith.constant 0 : i32
    %c0_i32_1 = arith.constant 0 : i32
    return %c0_i32, %c0_i32_0 : i32, i32
  }
  func.func @transform_6(%arg0: i32) -> (i32, i32) {
    %c0_i32 = arith.constant 0 : i32
    %c0_i32_0 = arith.constant 0 : i32
    return %arg0, %c0_i32 : i32, i32
  }
}

</mosaic_0001>

<bundles_post_ra>
// kernel: tpu_custom_call.1
= control target key start
LH: loop header
LB: loop body
LE: loop exit
PB: predicated region body
PF: predicated region fallthrough
CT: control target
= control target key end

     0   :  { %vm46_vm0 = vcmask 1043456   ;;  %vm39_vm1 = vcmask 64512   ;;  %s330_s0 = inlined_call_operand.vmem [shape: f32[32,8], index: 0, kind: input, shape index: {}]   ;;  %s331_s1 = inlined_call_operand.vmem [shape: bf16[8,128], index: 1, kind: input, shape index: {}]   ;;  %s332_s2 = inlined_call_operand.vmem [shape: f32[1,128], index: 2, kind: input, shape index: {}]   ;;  %s333_s3 = inlined_call_operand.vmem [shape: f32[32,128], index: 3, kind: input, shape index: {}]   ;;  %s334_s4 = inlined_call_operand.vmem [shape: f32[1,128], index: 4, kind: input, shape index: {}]   ;;  %s335_s5 = inlined_call_operand.vmem [shape: f32[1,128], index: 5, kind: input, shape index: {}]   ;;  %s336_s6 = inlined_call_operand.hbm [shape: f32[32,128], index: 6, kind: output, shape index: {}]  }
   0x1   :  { %v31_v0 = vld [vmem:[%s331_s1] sm:$0xf]  ;;  %v26_v2 = vld [vmem:[%s330_s0 + $0x8] sm:$0xff]  ;;  %v27_v5 = vld [vmem:[%s330_s0 + $0x10] sm:$0xff] }
   0x2   :  { %v25_v1 = vld [vmem:[%s330_s0] sm:$0xff]  ;;  %208 = vmatprep.subr.msk.bf16.mxu0 %vm46_vm0, %v31_v0  ;;  %v48_v3 = vsel %vm46_vm0, %v31_v0, 0  ;;  %v28_v6 = vld [vmem:[%s330_s0 + $0x18] sm:$0xff] }
   0x3   :  { %v29_v4 = vpack.c.bf16 %v26_v2, %v25_v1 }
   0x4   :  { %11 = vsyncpa [#allocation3], 0  ;;  %203 = vmatpush3.bf16.msra.mxu0 %v48_v3  ;;  %v30_v7 = vpack.c.bf16 %v28_v6, %v27_v5  ;;  %v194_v8 = vld [vmem:[%s332_s2] ss:$0 sm:$0xff]  ;;  %v101_v10 = vld [vmem:[%s333_s3 + $0x10] sm:$0xff]  ;;  %s244_s17 = smov [#allocation2]  }
   0x5   :  { %204 = vmatprep.mubr.msk.bf16.mxu0 %vm39_vm1, %v29_v4  ;;  %v99_v13 = vld [vmem:[%s333_s3] sm:$0xff]  ;;  %v102_v21 = vld [vmem:[%s333_s3 + $0x18] sm:$0xff]  ;;  %v100_v22 = vld [vmem:[%s333_s3 + $0x8] sm:$0xff] }
   0x6   :  { %v197_v54 = vld [vmem:[%s334_s4] ss:$0 sm:$0xff]  ;;  %s183_s4 = sshll.u32 %s244_s17, 4  ;;  %s184_s4 = int_to_ptr.vmem [resolvable:$true] %s183_s4 }
   0x7   :  { %205 = vmatmul.mubr.msk.bf16.vlgmr.msra.gmra.mrb[0].mxu0 %vm39_vm1, %v30_v7  ;;  %v198_v56 = vld [vmem:[%s335_s5] ss:$0 sm:$0xff]  ;;  %s220_s5 = scalar_lea.vmem %s184_s4, 512  ;;  %p225_p1 = scmp.lt.s32.totalorder %s184_s4, %s184_s4 }
   0x8   :  { %p221_p0 = scmp.ne.s32.totalorder %s184_s4, %s220_s5  ;;  %p226_p2 = scmp.lt.s32.totalorder %s220_s5, %s220_s5 }
   0xa   :  { %p227_p3 = por %p226_p2, %p225_p1 }
   0xc   :  { %p228_p4 = pnand %p227_p3, %p221_p0 }
  0xda   :  { %v206_v9 = vpop.f32.mrb[0].mxu0 }
  0xdb   :  { %v93_v11 = vadd.f32 %v206_v9, %v194_v8  ;;  %v84_v12 = vpop.f32.mrb[1].mxu0 }
  0xdc   :  { %v85_v14 = vadd.f32 %v194_v8, %v84_v12  ;;  %v207_v15 = vpop.f32.mrb[2].mxu0 }
  0xdd   :  { %v96_v16 = vadd.f32 %v207_v15, %v194_v8  ;;  %v87_v17 = vpop.f32.mrb[3].mxu0  ;;  %v105_v18 = vadd.f32 %v101_v10, %v93_v11 }
  0xde   :  { %v88_v19 = vadd.f32 %v194_v8, %v87_v17  ;;  %v103_v20 = vadd.f32 %v99_v13, %v85_v14 }
  0xdf   :  { %111 = vadd.xlane.f32.xlu1 %v105_v18  ;;  %v106_v23 = vadd.f32 %v102_v21, %v96_v16 }
  0xe0   :  { %107 = vadd.xlane.f32.xlu0 %v103_v20  ;;  %v104_v24 = vadd.f32 %v100_v22, %v88_v19 }
  0xe3   :  { %113 = vadd.xlane.f32.xlu1 %v106_v23 }
  0xe4   :  { %109 = vadd.xlane.f32.xlu0 %v104_v24 }
 0x16c   :  { %v112_v25 = vpop.xlane.xlu1 %111 }
 0x16d   :  { %v108_v26 = vpop.xlane.xlu0 %107  ;;  %v118_v27 = vmul.f32 0.0078125, %v112_v25 }
 0x16e   :  { %v116_v28 = vmul.f32 0.0078125, %v108_v26 }
 0x16f   :  { %v122_v32 = vsub.f32 %v105_v18, %v118_v27 }
 0x170   :  { %v120_v29 = vsub.f32 %v103_v20, %v116_v28  ;;  %v114_v30 = vpop.xlane.xlu1 %113 }
 0x171   :  { %v110_v31 = vpop.xlane.xlu0 %109  ;;  %v119_v33 = vmul.f32 0.0078125, %v114_v30  ;;  %v126_v38 = vmul.f32 %v122_v32, %v122_v32 }
 0x172   :  { %v117_v34 = vmul.f32 0.0078125, %v110_v31  ;;  %v124_v35 = vmul.f32 %v120_v29, %v120_v29 }
 0x173   :  { %v123_v37 = vsub.f32 %v106_v23, %v119_v33 }
 0x174   :  { %v121_v36 = vsub.f32 %v104_v24, %v117_v34  ;;  %128 = vadd.xlane.f32.xlu0 %v124_v35 }
 0x175   :  { %v127_v40 = vmul.f32 %v123_v37, %v123_v37 }
 0x176   :  { %v125_v39 = vmul.f32 %v121_v36, %v121_v36 }
 0x178   :  { %132 = vadd.xlane.f32.xlu0 %v126_v38  ;;  %130 = vadd.xlane.f32.xlu1 %v125_v39 }
 0x17c   :  { %134 = vadd.xlane.f32.xlu1 %v127_v40 }
 0x201   :  { %v129_v41 = vpop.xlane.xlu0 %128 }
 0x202   :  { %v136_v42 = vmul.f32 0.0078125, %v129_v41 }
 0x204   :  { %v140_v43 = vadd.f32 1e-12, %v136_v42 }
 0x205   :  { %v131_v44 = vpop.xlane.xlu1 %130  ;;  %v133_v45 = vpop.xlane.xlu0 %132 }
 0x206   :  { %212 = vrsqrt.f32 %v140_v43  ;;  %v137_v46 = vmul.f32 0.0078125, %v131_v44  ;;  %v138_v47 = vmul.f32 0.0078125, %v133_v45 }
 0x208   :  { %v141_v48 = vadd.f32 1e-12, %v137_v46  ;;  %v142_v49 = vadd.f32 1e-12, %v138_v47 }
 0x209   :  { %v135_v50 = vpop.xlane.xlu1 %134 }
 0x20a   :  { %214 = vrsqrt.f32 %v141_v48  ;;  %v139_v51 = vmul.f32 0.0078125, %v135_v50 }
 0x20b   :  { %216 = vrsqrt.f32 %v142_v49 }
 0x20c   :  { %v143_v52 = vadd.f32 1e-12, %v139_v51 }
 0x20e   :  { %218 = vrsqrt.f32 %v143_v52 }
 0x210   :  { %v213_v53 = vpop.eup %212 }
 0x211   :  { %v148_v55 = vmul.f32 %v213_v53, %v120_v29 }
 0x213   :  { %v159_v57 = vmul.f32 %v197_v54, %v148_v55 }
 0x214   :  { %v215_v58 = vpop.eup %214 }
 0x215   :  { %v217_v59 = vpop.eup %216  ;;  %v149_v60 = vmul.f32 %v215_v58, %v121_v36  ;;  %v170_v61 = vadd.f32 %v198_v56, %v159_v57 }
 0x216   :  { %v150_v62 = vmul.f32 %v217_v59, %v122_v32 }
 0x217   :  { %v160_v63 = vmul.f32 %v197_v54, %v149_v60  ;;  %174 = vst [vmem:[#allocation2] sm:$0xff] %v170_v61 }
 0x218   :  { %v219_v0 = vpop.eup %218  ;;  %v161_v1 = vmul.f32 %v197_v54, %v150_v62 }
 0x219   :  { %v151_v2 = vmul.f32 %v219_v0, %v123_v37  ;;  %v171_v3 = vadd.f32 %v198_v56, %v160_v63 }
 0x21a   :  { %v172_v4 = vadd.f32 %v198_v56, %v161_v1 }
 0x21b   :  { %v162_v5 = vmul.f32 %v197_v54, %v151_v2  ;;  %175 = vst [vmem:[#allocation2 + $0x8] sm:$0xff] %v171_v3 }
 0x21c   :  { %176 = vst [vmem:[#allocation2 + $0x10] sm:$0xff] %v172_v4 }
 0x21d   :  { %v173_v6 = vadd.f32 %v198_v56, %v162_v5 }
 0x21f   :  { %177 = vst [vmem:[#allocation2 + $0x18] sm:$0xff] %v173_v6 }
 0x220   :  { %231 = shalt.err (!%p228_p4)
}
 0x221   :  { %s232_s20 = scalar_lea.hbm %s336_s6, 512 }
 0x222   :  { %p233_p5 = scmp.ne.s32.totalorder %s336_s6, %s232_s20  ;;  %p236_p6 = scmp.lt.u32.totalorder %s232_s20, %s336_s6 }
 0x224   :  { %p238_p7 = pnand %p236_p6, %p233_p5 }
 0x226   :  { %241 = shalt.err (!%p238_p7)
}
 0x227   :  { %s245_s25 = smov 128   ;;  %s246_s26 = smov 8  }
 0x228   :  { %189 = dma.vmem_to_hbm [thread:$0]  %s184_s4, 512, %s336_s6, [#allocation3], %s245_s25, %s245_s25, %s246_s26  }
 0x229   :  { %242 = dma.done.wait [#allocation3], 512  }
 0x22a   :  { %243 = vsyncadd [#allocation3], 4294966784 }
 0x22b   :  { %193 = vsyncpa [#allocation3], 1 }

</bundles_post_ra>
